<compile_context>
chip_gen: v7x
topology: tpu7x:2x2x1
jax: 0.10.0
libtpu: 0.0.40
codegen_flags: <defaults>
</compile_context>

<pallas_src>
import functools

import jax
import jax.numpy as jnp
import numpy as np
from jax.experimental import pallas as pl
from jax.experimental.pallas import tpu as pltpu

EPS = 1e-5


# --------------------------------------------------------------------------- #
# Hardware-aware sizing helpers
# --------------------------------------------------------------------------- #
def _vmem_capacity_bytes():
    """Physical VMEM of the current generation; conservative default if unknown."""
    try:
        info = pltpu.get_tpu_info()
        for attr in ("vmem_capacity_bytes", "vmem_bytes", "vmem_size_bytes"):
            v = getattr(info, attr, None)
            if v:
                return int(v)
    except Exception:
        pass
    return 64 * 1024 * 1024  # v7x physical VMEM: safe everywhere


def _vmem_limit(bytes_needed, vmem_cap):
    """Scoped-VMEM limit: generous vs the estimated footprint, with headroom."""
    return int(min((vmem_cap * 3) // 4, max(32 << 20, int(1.5 * bytes_needed))))


def _choose_hw_tiling(hw, c, target_bytes):
    """Pick lane tile T (multiple of 128) and padded length HWp = nT * T.

    Aims for T >= 1024 lanes (measured ~86% of HBM roofline) while keeping the
    per-buffer footprint C*T*4B under `target_bytes`.  Prefers an exact divisor
    of the 128-aligned HW; otherwise pads HW so every tile is full & lane-dense.
    """
    lane_budget = max(128, ((target_bytes // (c * 4)) // 128) * 128)
    hw128 = ((hw + 127) // 128) * 128
    if hw128 <= lane_budget:
        return hw128, hw128
    q = hw128 // 128
    kmax = lane_budget // 128
    for k in range(kmax, 0, -1):
        if q % k == 0 and 128 * k >= min(1024, lane_budget):
            return 128 * k, hw128
    # Poor divisor structure: use ~budget-sized tiles and pad the tail tile.
    n_tiles = -(-hw128 // lane_budget)
    t = ((-(-hw // n_tiles) + 127) // 128) * 128
    return t, t * n_tiles


# --------------------------------------------------------------------------- #
# Shared coefficient fold (usable both in-kernel and in the JAX glue)
# --------------------------------------------------------------------------- #
def _fold_coefs(s1, s1f, s2, s2f, nf, nb, fg_gamma, fg_beta, bg_gamma, bg_beta):
    """Collapse region statistics + params into per-channel affines.

    Returns (a_b, b_b, da, db) such that out = (a_b + m*da)*x + (b_b + m*db):
        fg: a_f = (std_b/std_f)*(1+g_f),  b_f = (mu_b - mu_f*std_b/std_f)*(1+g_f)+beta_f
        bg: a_b = (1+g_b)/std_b,          b_b = (-mu_b/std_b)*(1+g_b)+beta_b
    """
    s1b = s1 - s1f
    s2b = s2 - s2f
    mu_f = s1f / (nf + EPS)
    mu_b = s1b / (nb + EPS)
    # Single-pass variance (clamped at 0 to guard against f32 cancellation).
    var_f = jnp.maximum((s2f - 2.0 * mu_f * s1f + mu_f * mu_f * nf) / (nf + EPS), 0.0)
    var_b = jnp.maximum((s2b - 2.0 * mu_b * s1b + mu_b * mu_b * nb) / (nb + EPS), 0.0)
    std_f = jnp.sqrt(var_f + EPS)
    std_b = jnp.sqrt(var_b + EPS)

    gf = 1.0 + fg_gamma
    gb = 1.0 + bg_gamma
    inv_std_b = 1.0 / std_b
    r = std_b / std_f
    a_f = r * gf
    b_f = (mu_b - mu_f * r) * gf + fg_beta
    a_b = inv_std_b * gb
    b_b = (-mu_b * inv_std_b) * gb + bg_beta
    return a_b, b_b, a_f - a_b, b_f - b_b


# --------------------------------------------------------------------------- #
# Kernels
# --------------------------------------------------------------------------- #
def _stats_kernel(x_ref, m_ref, sums_ref, sm_ref):
    """Accumulate [S(x), S(x*m), S(x^2), S(x^2*m)] -> (C,4) and S(m) -> (1,1)
    across the HW-tile ('arbitrary') grid axis."""
    t = pl.program_id(2)

    @pl.when(t == 0)
    def _init():
        sums_ref[...] = jnp.zeros_like(sums_ref)
        sm_ref[...] = jnp.zeros_like(sm_ref)

    x = x_ref[0].astype(jnp.float32)   # (C, T)
    m = m_ref[0].astype(jnp.float32)   # (1, T)
    xm = x * m
    x2 = x * x
    sums_ref[0, 0, :, 0:1] += jnp.sum(x, axis=-1, keepdims=True)
    sums_ref[0, 0, :, 1:2] += jnp.sum(xm, axis=-1, keepdims=True)
    sums_ref[0, 0, :, 2:3] += jnp.sum(x2, axis=-1, keepdims=True)
    sums_ref[0, 0, :, 3:4] += jnp.sum(x2 * m, axis=-1, keepdims=True)
    sm_ref[0, 0] += jnp.sum(m, axis=-1, keepdims=True)


def _apply_kernel(x_ref, m_ref, coef_ref, out_ref):
    """out = (a_b + m*da)*x + (b_b + m*db), coef = [a_b, b_b, da, db] per channel."""
    x = x_ref[0].astype(jnp.float32)   # (C, T)
    m = m_ref[0].astype(jnp.float32)   # (1, T)
    c = coef_ref[0]                    # (C, 4) f32
    a = c[:, 0:1] + m * c[:, 2:3]
    b = c[:, 1:2] + m * c[:, 3:4]
    out_ref[0] = (a * x + b).astype(out_ref.dtype)


def _fused_kernel(x_ref, m_ref, p_ref, out_ref, *, hw):
    """Single-pass RAIN: stats + coefficient fold + apply; one HBM read of x."""
    x = x_ref[0].astype(jnp.float32)    # (C, HW)
    m = m_ref[0].astype(jnp.float32)    # (1, HW)
    xm = x * m
    x2 = x * x

    s1 = jnp.sum(x, axis=-1, keepdims=True)        # (C, 1)
    s1f = jnp.sum(xm, axis=-1, keepdims=True)
    s2 = jnp.sum(x2, axis=-1, keepdims=True)
    s2f = jnp.sum(x2 * m, axis=-1, keepdims=True)
    nf = jnp.sum(m, axis=-1, keepdims=True)        # (1, 1)
    nb = hw - nf

    p = p_ref[0]                                   # (C, 4): [fg_g, fg_b, bg_g, bg_b]
    a_b, b_b, da, db = _fold_coefs(
        s1, s1f, s2, s2f, nf, nb, p[:, 0:1], p[:, 1:2], p[:, 2:3], p[:, 3:4])

    a = a_b + m * da
    b = b_b + m * db
    out_ref[0] = (a * x + b).astype(out_ref.dtype)


# --------------------------------------------------------------------------- #
# Wrapper / dispatch
# --------------------------------------------------------------------------- #
def nearest_interpolate(mask, size):
    """PyTorch F.interpolate(mode='nearest'): src index = floor(dst * in / out)."""
    _, _, hm, wm = mask.shape
    h, w = size
    ih = ((jnp.arange(h) * hm) // h).astype(jnp.int32)
    iw = ((jnp.arange(w) * wm) // w).astype(jnp.int32)
    return mask[:, :, ih][:, :, :, iw]


def _rain_fused(xf, m, params, vmem_cap):
    N, C, HW = xf.shape
    xb = xf.dtype.itemsize
    need = 2 * (2 * C * HW * xb + HW * 2) + 6 * C * HW * 4
    return pl.pallas_call(
        functools.partial(_fused_kernel, hw=float(HW)),
        out_shape=jax.ShapeDtypeStruct((N, C, HW), xf.dtype),
        grid_spec=pltpu.PrefetchScalarGridSpec(
            num_scalar_prefetch=0,
            grid=(N,),
            in_specs=[
                pl.BlockSpec((1, C, HW), lambda n: (n, 0, 0)),
                pl.BlockSpec((1, 1, HW), lambda n: (n, 0, 0)),
                pl.BlockSpec((1, C, 4), lambda n: (0, 0, 0)),
            ],
            out_specs=pl.BlockSpec((1, C, HW), lambda n: (n, 0, 0)),
        ),
        compiler_params=pltpu.CompilerParams(
            dimension_semantics=("parallel",),
            vmem_limit_bytes=_vmem_limit(need, vmem_cap),
        ),
    )(xf, m, params)


def _rain_two_pass(xf, m, fg_gamma, fg_beta, bg_gamma, bg_beta, vmem_cap):
    N, C, HW = xf.shape
    xb = xf.dtype.itemsize
    target = (4 << 20) if vmem_cap >= (96 << 20) else (2 << 20)   # v5e/v6e vs v7x
    T, HWp = _choose_hw_tiling(HW, C, target)
    nT = HWp // T
    if HWp != HW:
        pad = HWp - HW
        # Zero pad: contributes nothing to any of the sums; background count
        # below uses the ORIGINAL HW so pad pixels are never counted.
        xf = jnp.pad(xf, ((0, 0), (0, 0), (0, pad)))
        m = jnp.pad(m, ((0, 0), (0, 0), (0, pad)))
    # Split the HW axis across both TensorCores (helps v7x when N is small).
    P = 2 if (nT >= 2 and nT % 2 == 0) else 1
    nTp = nT // P

    # -------- pass 1: streaming statistics --------
    sums_p, sm_p = pl.pallas_call(
        _stats_kernel,
        out_shape=(
            jax.ShapeDtypeStruct((N, P, C, 4), jnp.float32),
            jax.ShapeDtypeStruct((N, P, 1, 1), jnp.float32),
        ),
        grid_spec=pltpu.PrefetchScalarGridSpec(
            num_scalar_prefetch=0,
            grid=(N, P, nTp),
            in_specs=[
                pl.BlockSpec((1, C, T), lambda n, p, t: (n, 0, p * nTp + t)),
                pl.BlockSpec((1, 1, T), lambda n, p, t: (n, 0, p * nTp + t)),
            ],
            out_specs=[
                pl.BlockSpec((1, 1, C, 4), lambda n, p, t: (n, p, 0, 0)),
                pl.BlockSpec((1, 1, 1, 1), lambda n, p, t: (n, p, 0, 0)),
            ],
        ),
        compiler_params=pltpu.CompilerParams(
            dimension_semantics=("parallel", "parallel", "arbitrary"),
            vmem_limit_bytes=_vmem_limit(2 * (C * T * xb + T * 2), vmem_cap),
        ),
    )(xf, m)

    # -------- fold stats + params into per-channel affine coefficients --------
    sums = jnp.sum(sums_p, axis=1)                 # (N, C, 4)
    nf = jnp.sum(sm_p, axis=1)[:, :, 0]            # (N, 1)
    nb = float(HW) - nf                            # original HW (pad isn't background)
    a_b, b_b, da, db = _fold_coefs(
        sums[..., 0], sums[..., 1], sums[..., 2], sums[..., 3], nf, nb,
        fg_gamma[None, :].astype(jnp.float32), fg_beta[None, :].astype(jnp.float32),
        bg_gamma[None, :].astype(jnp.float32), bg_beta[None, :].astype(jnp.float32))
    coef = jnp.stack([a_b, b_b, da, db], axis=-1)  # (N, C, 4) f32

    # -------- pass 2: fused normalize/affine apply --------
    if nT >= 3:   # deeper prefetch: apply pass is pure streaming (exposed DMA)
        x_spec = pl.BlockSpec((1, C, T), lambda n, t: (n, 0, t),
                              pipeline_mode=pl.Buffered(3))
        x_bufs = 3
    else:
        x_spec = pl.BlockSpec((1, C, T), lambda n, t: (n, 0, t))
        x_bufs = 2
    out = pl.pallas_call(
        _apply_kernel,
        out_shape=jax.ShapeDtypeStruct((N, C, HWp), xf.dtype),
        grid_spec=pltpu.PrefetchScalarGridSpec(
            num_scalar_prefetch=0,
            grid=(N, nT),
            in_specs=[
                x_spec,
                pl.BlockSpec((1, 1, T), lambda n, t: (n, 0, t)),
                pl.BlockSpec((1, C, 4), lambda n, t: (n, 0, 0)),
            ],
            out_specs=pl.BlockSpec((1, C, T), lambda n, t: (n, 0, t)),
        ),
        compiler_params=pltpu.CompilerParams(
            dimension_semantics=("parallel", "parallel"),
            vmem_limit_bytes=_vmem_limit(
                (x_bufs + 2) * C * T * xb + 2 * C * T * 4 + 2 * T * 2, vmem_cap),
        ),
    )(xf, m, coef)
    if HWp != HW:
        out = out[:, :, :HW]
    return out


@functools.partial(jax.jit, static_argnames=("force_two_pass",))
def rain_pallas(x, mask, fg_gamma, fg_beta, bg_gamma, bg_beta, force_two_pass=False):
    N, C, H, W = x.shape
    HW = H * W
    vmem_cap = _vmem_capacity_bytes()

    xf = x.reshape(N, C, HW)
    # Binary mask streamed as bf16 (exact): halves its HBM traffic in both passes.
    m = nearest_interpolate(mask, (H, W)).reshape(N, 1, HW).astype(jnp.bfloat16)

    # Fused single-pass path when one image (double-buffered, plus f32
    # temporaries) comfortably fits the generation's VMEM.
    fused_need = 2 * (2 * C * HW * x.dtype.itemsize + HW * 2) + 6 * C * HW * 4
    if (not force_two_pass) and fused_need <= (vmem_cap * 6) // 10:
        params = jnp.stack([fg_gamma, fg_beta, bg_gamma, bg_beta], axis=-1)
        params = params.astype(jnp.float32)[None]          # (1, C, 4)
        out = _rain_fused(xf, m, params, vmem_cap)
    else:
        out = _rain_two_pass(xf, m, fg_gamma, fg_beta, bg_gamma, bg_beta, vmem_cap)
    return out.reshape(N, C, H, W)


# --------------------------------------------------------------------------- #
# Pure-JAX reference (mirrors the PyTorch module exactly) for validation
# --------------------------------------------------------------------------- #
def rain_reference(x, mask, fg_gamma, fg_beta, bg_gamma, bg_beta):
    N, C, H, W = x.shape
    m = nearest_interpolate(mask, (H, W))

    def fg_mean_std(region, msk):
        s = jnp.sum(region, axis=(2, 3))
        num = jnp.sum(msk, axis=(2, 3))
        mu = s / (num + EPS)
        mean = mu[:, :, None, None]
        var = jnp.sum((region + (1 - msk) * mean - mean) ** 2, axis=(2, 3)) / (num + EPS)
        var = var[:, :, None, None]
        return mean, jnp.sqrt(var + EPS)

    mean_back, std_back = fg_mean_std(x * (1 - m), 1 - m)
    normalized = (x - mean_back) / std_back
    normalized_background = (
        normalized * (1 + bg_gamma[None, :, None, None]) + bg_beta[None, :, None, None]
    ) * (1 - m)
    mean_fore, std_fore = fg_mean_std(x * m, m)
    normalized = (x - mean_fore) / std_fore * std_back + mean_back
    normalized_foreground = (
        normalized * (1 + fg_gamma[None, :, None, None]) + fg_beta[None, :, None, None]
    ) * m
    return normalized_foreground + normalized_background


if __name__ == "__main__":
    N, C, H, W = 2, 4, 16, 16
    key = jax.random.PRNGKey(0)
    kx, km = jax.random.split(key)
    x = jax.random.normal(kx, (N, C, H, W), dtype=jnp.float32)
    # Binary mask at half resolution to exercise the nearest-interpolation path.
    mask = (jax.random.uniform(km, (N, 1, H // 2, W // 2)) > 0.5).astype(jnp.float32)

    # Module initializes params to zero; use small nonzero values so the affine
    # terms are actually exercised.
    fg_gamma = 0.10 * jnp.arange(C, dtype=jnp.float32)
    fg_beta = -0.05 * jnp.arange(C, dtype=jnp.float32)
    bg_gamma = 0.07 * jnp.arange(C, dtype=jnp.float32)
    bg_beta = 0.03 * jnp.arange(C, dtype=jnp.float32)

    ref = rain_reference(x, mask, fg_gamma, fg_beta, bg_gamma, bg_beta)

    # Fused single-pass path (taken automatically at this small size).
    out_fused = jax.block_until_ready(
        rain_pallas(x, mask, fg_gamma, fg_beta, bg_gamma, bg_beta))
    np.testing.assert_allclose(np.asarray(out_fused), np.asarray(ref),
                               rtol=1e-5, atol=3e-5)

    # Two-pass (stats + apply) path, forced, to validate the large-image route.
    out_two = jax.block_until_ready(
        rain_pallas(x, mask, fg_gamma, fg_beta, bg_gamma, bg_beta,
                    force_two_pass=True))
    np.testing.assert_allclose(np.asarray(out_two), np.asarray(ref),
                               rtol=1e-5, atol=3e-5)

    print("KERNEL_OK")
</pallas_src>

<mosaic_0001>
module attributes {stable_mosaic.version = 11 : i64} {
  func.func @_fused_kernel(%arg0: i32, %arg1: memref<1x4x256xf32, #tpu.memory_space<vmem>>, %arg2: memref<1x1x256xbf16, #tpu.memory_space<vmem>>, %arg3: memref<1x4x4xf32, #tpu.memory_space<vmem>>, %arg4: memref<1x4x256xf32, #tpu.memory_space<vmem>>) attributes {dimension_semantics = [#tpu.dimension_semantics<parallel>], iteration_bounds = array<i64: 2>, scalar_prefetch = 0 : i64, scratch_operands = 0 : i64, tpu.core_type = #tpu.core_type<tc>, window_params = [{transform_indices = @transform_0, window_bounds = array<i64: 1, 4, 256>}, {transform_indices = @transform_1, window_bounds = array<i64: 1, 1, 256>}, {pipeline_mode = #tpu.pipeline_mode<synchronous>, transform_indices = @transform_2, window_bounds = array<i64: 1, 4, 4>}, {transform_indices = @transform_3, window_bounds = array<i64: 1, 4, 256>}]} {
    %c0 = arith.constant 0 : index
    %c0_0 = arith.constant 0 : index
    %c0_1 = arith.constant 0 : index
    %0 = vector.load %arg1[%c0, %c0_0, %c0_1] : memref<1x4x256xf32, #tpu.memory_space<vmem>>, vector<1x4x256xf32>
    %1 = vector.shape_cast %0 : vector<1x4x256xf32> to vector<4x256xf32>
    %c0_2 = arith.constant 0 : index
    %c0_3 = arith.constant 0 : index
    %c0_4 = arith.constant 0 : index
    %2 = vector.load %arg2[%c0_2, %c0_3, %c0_4] : memref<1x1x256xbf16, #tpu.memory_space<vmem>>, vector<1x1x256xbf16>
    %3 = vector.shape_cast %2 : vector<1x1x256xbf16> to vector<1x256xbf16>
    %4 = arith.extf %3 : vector<1x256xbf16> to vector<1x256xf32>
    %5 = vector.broadcast %4 : vector<1x256xf32> to vector<4x256xf32>
    %6 = arith.mulf %1, %5 : vector<4x256xf32>
    %7 = arith.mulf %1, %1 : vector<4x256xf32>
    %cst = arith.constant dense<0.000000e+00> : vector<4xf32>
    %8 = vector.multi_reduction <add>, %1, %cst [1] : vector<4x256xf32> to vector<4xf32>
    %9 = vector.shape_cast %8 : vector<4xf32> to vector<4x1xf32>
    %cst_5 = arith.constant dense<0.000000e+00> : vector<4xf32>
    %10 = vector.multi_reduction <add>, %6, %cst_5 [1] : vector<4x256xf32> to vector<4xf32>
    %11 = vector.shape_cast %10 : vector<4xf32> to vector<4x1xf32>
    %cst_6 = arith.constant dense<0.000000e+00> : vector<4xf32>
    %12 = vector.multi_reduction <add>, %7, %cst_6 [1] : vector<4x256xf32> to vector<4xf32>
    %13 = vector.shape_cast %12 : vector<4xf32> to vector<4x1xf32>
    %14 = vector.broadcast %4 : vector<1x256xf32> to vector<4x256xf32>
    %15 = arith.mulf %7, %14 : vector<4x256xf32>
    %cst_7 = arith.constant dense<0.000000e+00> : vector<4xf32>
    %16 = vector.multi_reduction <add>, %15, %cst_7 [1] : vector<4x256xf32> to vector<4xf32>
    %17 = vector.shape_cast %16 : vector<4xf32> to vector<4x1xf32>
    %cst_8 = arith.constant dense<0.000000e+00> : vector<1xf32>
    %18 = vector.multi_reduction <add>, %4, %cst_8 [1] : vector<1x256xf32> to vector<1xf32>
    %19 = vector.shape_cast %18 : vector<1xf32> to vector<1x1xf32>
    %cst_9 = arith.constant 2.560000e+02 : f32
    %20 = vector.broadcast %cst_9 : f32 to vector<1x1xf32>
    %21 = arith.subf %20, %19 : vector<1x1xf32>
    %c0_10 = arith.constant 0 : index
    %c0_11 = arith.constant 0 : index
    %c0_12 = arith.constant 0 : index
    %22 = vector.load %arg3[%c0_10, %c0_11, %c0_12] : memref<1x4x4xf32, #tpu.memory_space<vmem>>, vector<1x4x4xf32>
    %23 = vector.shape_cast %22 : vector<1x4x4xf32> to vector<4x4xf32>
    %24 = vector.extract_strided_slice %23 {offsets = [0, 0], sizes = [4, 1], strides = [1, 1]} : vector<4x4xf32> to vector<4x1xf32>
    %25 = vector.extract_strided_slice %23 {offsets = [0, 1], sizes = [4, 1], strides = [1, 1]} : vector<4x4xf32> to vector<4x1xf32>
    %26 = vector.extract_strided_slice %23 {offsets = [0, 2], sizes = [4, 1], strides = [1, 1]} : vector<4x4xf32> to vector<4x1xf32>
    %27 = vector.extract_strided_slice %23 {offsets = [0, 3], sizes = [4, 1], strides = [1, 1]} : vector<4x4xf32> to vector<4x1xf32>
    %28 = arith.subf %9, %11 : vector<4x1xf32>
    %29 = arith.subf %13, %17 : vector<4x1xf32>
    %cst_13 = arith.constant 9.99999974E-6 : f32
    %30 = vector.broadcast %cst_13 : f32 to vector<1x1xf32>
    %31 = arith.addf %19, %30 : vector<1x1xf32>
    %32 = vector.broadcast %31 : vector<1x1xf32> to vector<4x1xf32>
    %33 = arith.divf %11, %32 : vector<4x1xf32>
    %cst_14 = arith.constant 9.99999974E-6 : f32
    %34 = vector.broadcast %cst_14 : f32 to vector<1x1xf32>
    %35 = arith.addf %21, %34 : vector<1x1xf32>
    %36 = vector.broadcast %35 : vector<1x1xf32> to vector<4x1xf32>
    %37 = arith.divf %28, %36 : vector<4x1xf32>
    %cst_15 = arith.constant 2.000000e+00 : f32
    %38 = vector.broadcast %cst_15 : f32 to vector<4x1xf32>
    %39 = arith.mulf %38, %33 : vector<4x1xf32>
    %40 = arith.mulf %39, %11 : vector<4x1xf32>
    %41 = arith.subf %17, %40 : vector<4x1xf32>
    %42 = arith.mulf %33, %33 : vector<4x1xf32>
    %43 = vector.broadcast %19 : vector<1x1xf32> to vector<4x1xf32>
    %44 = arith.mulf %42, %43 : vector<4x1xf32>
    %45 = arith.addf %41, %44 : vector<4x1xf32>
    %cst_16 = arith.constant 9.99999974E-6 : f32
    %46 = vector.broadcast %cst_16 : f32 to vector<1x1xf32>
    %47 = arith.addf %19, %46 : vector<1x1xf32>
    %48 = vector.broadcast %47 : vector<1x1xf32> to vector<4x1xf32>
    %49 = arith.divf %45, %48 : vector<4x1xf32>
    %cst_17 = arith.constant 0.000000e+00 : f32
    %50 = vector.broadcast %cst_17 : f32 to vector<4x1xf32>
    %51 = arith.maximumf %49, %50 : vector<4x1xf32>
    %cst_18 = arith.constant 2.000000e+00 : f32
    %52 = vector.broadcast %cst_18 : f32 to vector<4x1xf32>
    %53 = arith.mulf %52, %37 : vector<4x1xf32>
    %54 = arith.mulf %53, %28 : vector<4x1xf32>
    %55 = arith.subf %29, %54 : vector<4x1xf32>
    %56 = arith.mulf %37, %37 : vector<4x1xf32>
    %57 = vector.broadcast %21 : vector<1x1xf32> to vector<4x1xf32>
    %58 = arith.mulf %56, %57 : vector<4x1xf32>
    %59 = arith.addf %55, %58 : vector<4x1xf32>
    %cst_19 = arith.constant 9.99999974E-6 : f32
    %60 = vector.broadcast %cst_19 : f32 to vector<1x1xf32>
    %61 = arith.addf %21, %60 : vector<1x1xf32>
    %62 = vector.broadcast %61 : vector<1x1xf32> to vector<4x1xf32>
    %63 = arith.divf %59, %62 : vector<4x1xf32>
    %cst_20 = arith.constant 0.000000e+00 : f32
    %64 = vector.broadcast %cst_20 : f32 to vector<4x1xf32>
    %65 = arith.maximumf %63, %64 : vector<4x1xf32>
    %cst_21 = arith.constant 9.99999974E-6 : f32
    %66 = vector.broadcast %cst_21 : f32 to vector<4x1xf32>
    %67 = arith.addf %51, %66 : vector<4x1xf32>
    %68 = math.sqrt %67 : vector<4x1xf32>
    %cst_22 = arith.constant 9.99999974E-6 : f32
    %69 = vector.broadcast %cst_22 : f32 to vector<4x1xf32>
    %70 = arith.addf %65, %69 : vector<4x1xf32>
    %71 = math.sqrt %70 : vector<4x1xf32>
    %cst_23 = arith.constant 1.000000e+00 : f32
    %72 = vector.broadcast %cst_23 : f32 to vector<4x1xf32>
    %73 = arith.addf %72, %24 : vector<4x1xf32>
    %cst_24 = arith.constant 1.000000e+00 : f32
    %74 = vector.broadcast %cst_24 : f32 to vector<4x1xf32>
    %75 = arith.addf %74, %26 : vector<4x1xf32>
    %cst_25 = arith.constant 1.000000e+00 : f32
    %76 = vector.broadcast %cst_25 : f32 to vector<4x1xf32>
    %77 = arith.divf %76, %71 : vector<4x1xf32>
    %78 = arith.divf %71, %68 : vector<4x1xf32>
    %79 = arith.mulf %78, %73 : vector<4x1xf32>
    %80 = arith.mulf %33, %78 : vector<4x1xf32>
    %81 = arith.subf %37, %80 : vector<4x1xf32>
    %82 = arith.mulf %81, %73 : vector<4x1xf32>
    %83 = arith.addf %82, %25 : vector<4x1xf32>
    %84 = arith.mulf %77, %75 : vector<4x1xf32>
    %cst_26 = arith.constant 0.000000e+00 : f32
    %85 = vector.broadcast %cst_26 : f32 to vector<4x1xf32>
    %86 = arith.subf %85, %37 : vector<4x1xf32>
    %87 = arith.mulf %86, %77 : vector<4x1xf32>
    %88 = arith.mulf %87, %75 : vector<4x1xf32>
    %89 = arith.addf %88, %27 : vector<4x1xf32>
    %90 = arith.subf %79, %84 : vector<4x1xf32>
    %91 = arith.subf %83, %89 : vector<4x1xf32>
    %92 = vector.broadcast %4 : vector<1x256xf32> to vector<4x256xf32>
    %93 = vector.broadcast %90 : vector<4x1xf32> to vector<4x256xf32>
    %94 = arith.mulf %92, %93 : vector<4x256xf32>
    %95 = vector.broadcast %84 : vector<4x1xf32> to vector<4x256xf32>
    %96 = arith.addf %95, %94 : vector<4x256xf32>
    %97 = vector.broadcast %4 : vector<1x256xf32> to vector<4x256xf32>
    %98 = vector.broadcast %91 : vector<4x1xf32> to vector<4x256xf32>
    %99 = arith.mulf %97, %98 : vector<4x256xf32>
    %100 = vector.broadcast %89 : vector<4x1xf32> to vector<4x256xf32>
    %101 = arith.addf %100, %99 : vector<4x256xf32>
    %102 = arith.mulf %96, %1 : vector<4x256xf32>
    %103 = arith.addf %102, %101 : vector<4x256xf32>
    %c0_27 = arith.constant 0 : index
    %c0_28 = arith.constant 0 : index
    %c0_29 = arith.constant 0 : index
    %104 = vector.load %arg4[%c0_27, %c0_28, %c0_29] : memref<1x4x256xf32, #tpu.memory_space<vmem>>, vector<1x4x256xf32>
    %105 = vector.shape_cast %104 : vector<1x4x256xf32> to vector<4x256xf32>
    %106 = vector.shape_cast %103 : vector<4x256xf32> to vector<1x4x256xf32>
    tpu.vector_store %arg4[%c0_27, %c0_28, %c0_29], %106 {strides = array<i32>} : memref<1x4x256xf32, #tpu.memory_space<vmem>>, vector<1x4x256xf32>,
    return
  }
  func.func @transform_0(%arg0: i32) -> (i32, i32, i32) {
    %c0_i32 = arith.constant 0 : i32
    %c0_i32_0 = arith.constant 0 : i32
    %c0_i32_1 = arith.constant 0 : i32
    return %arg0, %c0_i32, %c0_i32_0 : i32, i32, i32
  }
  func.func @transform_1(%arg0: i32) -> (i32, i32, i32) {
    %c0_i32 = arith.constant 0 : i32
    %c0_i32_0 = arith.constant 0 : i32
    %c0_i32_1 = arith.constant 0 : i32
    return %arg0, %c0_i32, %c0_i32_0 : i32, i32, i32
  }
  func.func @transform_2(%arg0: i32) -> (i32, i32, i32) {
    %c0_i32 = arith.constant 0 : i32
    %c0_i32_0 = arith.constant 0 : i32
    %c0_i32_1 = arith.constant 0 : i32
    %c0_i32_2 = arith.constant 0 : i32
    return %c0_i32, %c0_i32_0, %c0_i32_1 : i32, i32, i32
  }
  func.func @transform_3(%arg0: i32) -> (i32, i32, i32) {
    %c0_i32 = arith.constant 0 : i32
    %c0_i32_0 = arith.constant 0 : i32
    %c0_i32_1 = arith.constant 0 : i32
    return %arg0, %c0_i32, %c0_i32_0 : i32, i32, i32
  }
}

</mosaic_0001>

<bundles_post_ra>
// kernel: rain_pallas.1
= control target key start
LH: loop header
LB: loop body
LE: loop exit
PB: predicated region body
PF: predicated region fallthrough
CT: control target
= control target key end

     0   :  { %s521_s12 = smov 0   ;;  %s595_s0 = inlined_call_operand.vmem [shape: f32[2,4,256], index: 0, kind: input, shape index: {}]   ;;  %s596_s1 = inlined_call_operand.vmem [shape: bf16[2,1,256], index: 1, kind: input, shape index: {}]   ;;  %s597_s2 = inlined_call_operand.vmem [shape: f32[1,4,4], index: 2, kind: input, shape index: {}]   ;;  %s598_s3 = inlined_call_operand.vmem [shape: f32[2,4,256], index: 3, kind: output, shape index: {}]  }
   0x1 LB: > { %s445_s13 = sadd.s32 4294967295, %s495_s12   ;;  %p449_p0 = scmp.ge.s32.totalorder %s495_s12, 1  ;;  %s495_s12 = sphi %s521_s12, %s13_s12  }
   0x2   : > { %p146_p1 = scmp.lt.s32.totalorder %s495_s12, 3 }
   0x4   : > { %p147_p2 = pnand %p449_p0, %p146_p1 }
   0x5   : > { %p174_p3 = scmp.lt.s32.totalorder (!%p147_p2), %s445_s13, 1  ;;  %v192_v0 = vlaneseq (!%p147_p2)  ;;  %vm219_vm0 = vcmask (!%p147_p2), 1043456   ;;  %vm250_vm1 = vcmask (!%p147_p2), 1040384   ;;  %v257_v34 = vld [vmem:[%s597_s2] sm:$0xf] (!%p147_p2)  ;;  %s497_s24 = smov (!%p147_p2), 127  }
   0x6   : > { %150 = sbr.rel (%p147_p2) target bundleno = 485 (0x1e5), region = 32  ;;  %v498_v35 = vmov (!%p147_p2), 2   ;;  %s500_s25 = smov (!%p147_p2), 126  }
   0x7   : > { %v193_v1 = vshrl.u32 (!%p147_p2), %v192_v0, 7  ;;  %471 = vset.pattern.permute.xlu1 (!%p147_p2), %v498_v35 }
   0x9   : > { %v536_v2 = vsub.s32 (!%p147_p2), 0, %v193_v1  ;;  %v198_v3 = vsub.s32 (!%p147_p2), 2, %v193_v1 }
   0xd   : > { %s600_s13 = smov (!%p174_p3, %s445_s13), 1 }
   0xe   : > { %s452_s14 = sshll.u32 %s600_s13, 1  ;;  %s457_s15 = sshll.u32 %s600_s13, 3 }
   0xf   : > { %s182_s18 = scalar_lea.vmem %s596_s1, %s452_s14  ;;  %s178_s21 = scalar_lea.vmem %s595_s0, %s457_s15 }
  0x10   : > { %v189_v4 = vld [vmem:[%s182_s18] sm:$0x3]  ;;  %s187_s28 = scalar_lea.vmem %s598_s3, %s457_s15 }
  0x11   : > { %v543_v5 = vld [vmem:[%s178_s21] sm:$0xff]  ;;  %v190_v6 = vunpack.c.l.bf16 %v189_v4 }
  0x12   : > { %v547_v7 = vcombine.high %v543_v5, %v543_v5  ;;  %v220_v10 = vsel %vm219_vm0, %v543_v5, 0.0  ;;  %v215_v12 = vmul.f32 %v543_v5, %v543_v5 }
  0x13   : > { %v195_v8 = vrot.slane %v190_v6, %v536_v2  ;;  %v199_v9 = vrot.slane %v190_v6, %v198_v3 }
  0x14   : > { %v221_v11 = vsel %vm219_vm0, %v547_v7, 0.0  ;;  %v234_v22 = vcombine.high %v215_v12, %v215_v12  ;;  %v236_v29 = vsel %vm219_vm0, %v215_v12, 0.0 }
  0x15   : > { %v557_v13 = vrot.slane %v199_v9, %v536_v2  ;;  %v251_v14 = vsel %vm250_vm1, %v195_v8, 0.0  ;;  %v252_v15 = vsel %vm250_vm1, %v199_v9, 0.0  ;;  %v560_v16 = vrot.slane %v195_v8, %v536_v2 }
  0x16   : > { %v253_v17 = vadd.f32 %v252_v15, %v251_v14  ;;  %v222_v19 = vadd.f32 %v221_v11, %v220_v10  ;;  %v237_v30 = vsel %vm219_vm0, %v234_v22, 0.0  ;;  %v499_v22 = vmov 0  }
  0x17   : > { %v212_v18 = vcombine.low %v560_v16, %v557_v13  ;;  %v238_v33 = vadd.f32 %v237_v30, %v236_v29  ;;  %473 = vset.pattern.permute.xlu0 %v499_v22 }
  0x18   : > { %254 = vadd.xlane.f32.xlu0 %v253_v17 }
  0x19   : > { %v214_v20 = vmul.f32 %v212_v18, %v543_v5  ;;  %v241_v21 = vmul.f32 %v215_v12, %v212_v18 }
  0x1b   : > { %v226_v23 = vcombine.high %v214_v20, %v214_v20  ;;  %v228_v24 = vsel %vm219_vm0, %v214_v20, 0.0  ;;  %v243_v25 = vcombine.high %v241_v21, %v241_v21  ;;  %v245_v26 = vsel %vm219_vm0, %v241_v21, 0.0 }
  0x1c   : > { %223 = vadd.xlane.f32.xlu0 %v222_v19 }
  0x1d   : > { %v229_v27 = vsel %vm219_vm0, %v226_v23, 0.0  ;;  %v246_v28 = vsel %vm219_vm0, %v243_v25, 0.0  ;;  %v314_v23 = vadd.f32 1.0, %v257_v34 }
  0x1e   : > { %v230_v31 = vadd.f32 %v229_v27, %v228_v24  ;;  %v247_v32 = vadd.f32 %v246_v28, %v245_v26 }
  0x20   : > { %231 = vadd.xlane.f32.xlu1 %v230_v31  ;;  %248 = vadd.xlane.f32.xlu0 %v247_v32 }
  0x24   : > { %239 = vadd.xlane.f32.xlu1 %v238_v33 }
  0x35   : > { %324 = vrot.lane.b32.xlu1 %v257_v34, %s497_s24 }
  0xa5   : > { %v255_v36 = vpop.xlane.xlu0 %254 }
  0xa6   : > { %v256_v37 = vsub.f32 256.0, %v255_v36  ;;  %v260_v38 = vadd.f32 1e-05, %v255_v36  ;;  %v281_v50 = vrot.slane %v255_v36, %v536_v2 }
  0xa8   : > { %v264_v39 = vrot.slane %v260_v38, %v536_v2  ;;  %v267_v40 = vadd.f32 1e-05, %v256_v37  ;;  %v293_v59 = vrot.slane %v256_v37, %v536_v2 }
  0xa9   : > { %v224_v42 = vpop.xlane.xlu0 %223 }
  0xaa   : > { %477 = vrcp.f32 %v264_v39  ;;  %v271_v41 = vrot.slane %v267_v40, %v536_v2 }
  0xac   : > { %479 = vrcp.f32 %v271_v41 }
  0xad   : > { %v232_v43 = vpop.xlane.xlu1 %231  ;;  %v249_v47 = vpop.xlane.xlu0 %248 }
  0xae   : > { %v258_v44 = vsub.f32 %v224_v42, %v232_v43 }
  0xb1   : > { %v240_v48 = vpop.xlane.xlu1 %239 }
  0xb2   : > { %v259_v54 = vsub.f32 %v240_v48, %v249_v47 }
  0xb4   : > { %v478_v45 = vpop.eup %477 }
  0xb5   : > { %v266_v46 = vmul.f32 %v478_v45, %v232_v43  ;;  %v325_v32 = vpop.permute.xlu1 %324 }
  0xb6   : > { %v480_v49 = vpop.eup %479 }
  0xb7   : > { %v273_v51 = vmul.f32 %v480_v49, %v258_v44  ;;  %v274_v52 = vmul.f32 2.0, %v266_v46  ;;  %v277_v53 = vmul.f32 %v266_v46, %v266_v46 }
  0xb9   : > { %v275_v55 = vmul.f32 %v274_v52, %v232_v43  ;;  %v282_v56 = vmul.f32 %v281_v50, %v277_v53  ;;  %v286_v57 = vmul.f32 2.0, %v273_v51  ;;  %v289_v58 = vmul.f32 %v273_v51, %v273_v51 }
  0xba   : > { %v329_v26 = vsub.f32 0.0, %v273_v51 }
  0xbb   : > { %v276_v60 = vsub.f32 %v249_v47, %v275_v55  ;;  %v287_v61 = vmul.f32 %v286_v57, %v258_v44  ;;  %v294_v63 = vmul.f32 %v293_v59, %v289_v58 }
  0xbd   : > { %v283_v62 = vadd.f32 %v282_v56, %v276_v60  ;;  %v288_v0 = vsub.f32 %v259_v54, %v287_v61 }
  0xbf   : > { %v284_v1 = vmul.f32 %v478_v45, %v283_v62  ;;  %v295_v3 = vadd.f32 %v294_v63, %v288_v0 }
  0xc1   : > { %v285_v4 = vmax.f32 %v284_v1, 0.0  ;;  %v296_v6 = vmul.f32 %v480_v49, %v295_v3 }
  0xc3   : > { %v298_v8 = vadd.f32 1e-05, %v285_v4  ;;  %v297_v9 = vmax.f32 %v296_v6, 0.0 }
  0xc5   : > { %481 = vrsqrt.f32 %v298_v8  ;;  %v306_v10 = vadd.f32 1e-05, %v297_v9  ;;  %vm301_vm2 = vcmp.eq.f32.partialorder %v298_v8, inf  ;;  %v304_v15 = vand.u32 2147483648, %v298_v8 }
  0xc6   : > { %vm303_vm3 = vcmp.eq.f32.partialorder %v298_v8, 0.0 }
  0xc7   : > { %483 = vrsqrt.f32 %v306_v10  ;;  %vm309_vm4 = vcmp.eq.f32.partialorder %v306_v10, inf  ;;  %v312_v18 = vand.u32 2147483648, %v306_v10  ;;  %vm311_vm5 = vcmp.eq.f32.partialorder %v306_v10, 0.0 }
  0xcf   : > { %v482_v11 = vpop.eup %481 }
  0xd0   : > { %v300_v12 = vmul.f32 %v482_v11, %v298_v8 }
  0xd1   : > { %v484_v14 = vpop.eup %483 }
  0xd2   : > { %v308_v2 = vmul.f32 %v484_v14, %v306_v10  ;;  %v302_v17 = vsel %vm301_vm2, %v298_v8, %v300_v12 }
  0xd3   : > { %v305_v19 = vsel %vm303_vm3, %v304_v15, %v302_v17 }
  0xd4   : > { %v310_v20 = vsel %vm309_vm4, %v306_v10, %v308_v2  ;;  %485 = vrcp.f32 %v305_v19 }
  0xd5   : > { %v313_v21 = vsel %vm311_vm5, %v312_v18, %v310_v20 }
  0xd6   : > { %487 = vrcp.f32 %v313_v21 }
  0xde   : > { %v486_v24 = vpop.eup %485 }
  0xdf   : > { %v318_v25 = vmul.f32 %v486_v24, %v313_v21 }
  0xe0   : > { %v488_v27 = vpop.eup %487 }
  0xe1   : > { %v328_v28 = vmul.f32 %v488_v27, %v314_v23  ;;  %v320_v29 = vmul.f32 %v318_v25, %v266_v46  ;;  %v330_v30 = vmul.f32 %v488_v27, %v329_v26  ;;  %v319_v31 = vmul.f32 %v318_v25, %v314_v23 }
  0xe3   : > { %334 = vrot.lane.b32.xlu0 %v328_v28, %s500_s25  ;;  %v321_v33 = vsub.f32 %v273_v51, %v320_v29  ;;  %v331_v36 = vmul.f32 %v330_v30, %v314_v23 }
  0xe5   : > { %v322_v37 = vmul.f32 %v321_v33, %v314_v23  ;;  %v332_v38 = vadd.f32 %v331_v36, %v325_v32 }
  0xe7   : > { %339 = vrot.lane.b32.xlu1 %v332_v38, %s500_s25  ;;  %v327_v40 = vadd.f32 %v325_v32, %v322_v37 }
  0xeb   : > { %351 = vperm.xlu1 %471, %v328_v28  }
  0xef   : > { %472 = vset.pattern.permute.xlu1 %v499_v22 }
 0x155   : > { %v335_v39 = vpop.permute.xlu0 %334 }
 0x156   : > { %v337_v34 = vsub.f32 %v319_v31, %v335_v39 }
 0x158   : > { %345 = vperm.xlu1 %472, %v337_v34  }
 0x159   : > { %v340_v41 = vpop.permute.xlu1 %339 }
 0x15a   : > { %v342_v42 = vsub.f32 %v327_v40, %v340_v41 }
 0x15c   : > { %474 = vset.pattern.permute.xlu1 %v498_v35  ;;  %358 = vperm.xlu0 %473, %v342_v42  }
 0x15d   : > { %364 = vperm.xlu1 %474, %v332_v38  }
 0x160   : > { %475 = vset.pattern.permute.xlu0 %v498_v35 }
 0x16a   : > { %v352_v43 = vpop.permute.xlu1 %351 }
 0x1d7   : > { %v346_v44 = vpop.permute.xlu1 %345 }
 0x1d8   : > { %v348_v45 = vmul.f32 %v346_v44, %v560_v16  ;;  %v349_v46 = vmul.f32 %v346_v44, %v557_v13 }
 0x1da   : > { %v354_v47 = vadd.f32 %v352_v43, %v348_v45  ;;  %v355_v48 = vadd.f32 %v352_v43, %v349_v46 }
 0x1db   : > { %v359_v49 = vpop.permute.xlu0 %358 }
 0x1dc   : > { %v361_v50 = vmul.f32 %v359_v49, %v560_v16  ;;  %v362_v51 = vmul.f32 %v359_v49, %v557_v13  ;;  %v365_v52 = vpop.permute.xlu1 %364  ;;  %v369_v53 = vmul.f32 %v354_v47, %v543_v5  ;;  %v370_v54 = vmul.f32 %v355_v48, %v547_v7 }
 0x1de   : > { %v367_v35 = vadd.f32 %v365_v52, %v361_v50  ;;  %v368_v55 = vadd.f32 %v365_v52, %v362_v51 }
 0x1e0   : > { %v371_v56 = vadd.f32 %v369_v53, %v367_v35  ;;  %v372_v57 = vadd.f32 %v370_v54, %v368_v55 }
 0x1e2   : > { %v375_v58 = vcombine.low %v371_v56, %v372_v57 }
 0x1e4   : > { %377 = vst [vmem:[%s187_s28] sm:$0xff] %v375_v58 }
 0x1e5 PF: > { %s13_s12 = sadd.s32 1, %s495_s12  }
 0x1e6   : > { %p10_p4 = scmp.ge.s32.totalorder %s13_s12, 4  }
 0x1e8   :  { %12 = sbr.rel (!%p10_p4) target bundleno = 1 (0x1), region = 65 }

</bundles_post_ra>
